<compile_context>
chip_gen: v5e
topology: v5e:2x2
jax: 0.10.0
libtpu: 0.0.40
codegen_flags: <defaults>
</compile_context>

<pallas_src>
import functools

import jax
import jax.numpy as jnp
import numpy as np
from jax import lax
from jax.experimental import pallas as pl
from jax.experimental.pallas import tpu as pltpu

M = 2  # number of SK branches (module default)


def _skconv_kernel(t0_ref, t1_ref,
                   w0_ref, b0_ref,
                   w1_ref, b1_ref,
                   wf1_ref, scf1_ref, bf1_ref,
                   wf2_ref,
                   v_ref, *, Cout, HW):
    f32 = jnp.float32

    # Branch convolutions as single canonical (Cout, K) x (K, HW) matmuls.
    # Operands are bf16 (weights have BN scale folded in), accumulation in f32.
    acc0 = jnp.dot(w0_ref[...], t0_ref[0], preferred_element_type=f32)   # (Cout, HW)
    acc1 = jnp.dot(w1_ref[...], t1_ref[0], preferred_element_type=f32)   # (Cout, HW)

    # Folded inference BatchNorm (scale already in weights) bias + ReLU.
    out0 = jnp.maximum(acc0 + b0_ref[...], 0.0)
    out1 = jnp.maximum(acc1 + b1_ref[...], 0.0)

    # U = sum of branches; global average pool over the spatial (lane) dim.
    u = out0 + out1
    s = jnp.sum(u, axis=1, keepdims=True) * (1.0 / HW)                   # (Cout, 1)

    # Squeeze-excite path. Broadcast the pooled vector to 128 lanes so the tiny
    # fc matmuls use a standard N=128 shape (all columns identical). bf16 at
    # the MXU, f32 accumulation and f32 elementwise math.
    s_b = jnp.broadcast_to(s, (Cout, 128)).astype(jnp.bfloat16)
    z = jnp.dot(wf1_ref[...], s_b, preferred_element_type=f32)           # (d, 128)
    z = jnp.maximum(z * scf1_ref[...] + bf1_ref[...], 0.0)
    logits = jnp.dot(wf2_ref[...], z.astype(jnp.bfloat16),
                     preferred_element_type=f32)                         # (M*Cout, 128)

    # Softmax over the branch axis (rows [0:Cout] vs [Cout:2*Cout]).
    l0 = logits[:Cout]
    l1 = logits[Cout:]
    mmax = jnp.maximum(l0, l1)
    e0 = jnp.exp(l0 - mmax)
    e1 = jnp.exp(l1 - mmax)
    inv = pl.reciprocal(e0 + e1, approx=True)                            # EUP slot
    a0 = (e0 * inv)[:, 0:1]                                              # (Cout, 1)
    a1 = (e1 * inv)[:, 0:1]

    # Attention-weighted sum of branch outputs; lane-dense (Cout, HW) store.
    v_ref[0] = (out0 * a0 + out1 * a1).astype(v_ref.dtype)


def _im2col(x_nchw, dilation):
    """Build the K-major, lane-dense conv operand (B, 9*Cin, H*W) in bf16.

    Reproduces Conv2d(kernel=3, stride=1, padding=dilation, dilation=dilation):
    tap (ky, kx) reads the padded image starting at (ky*dilation, kx*dilation).
    K index ordering is (ky*3 + kx) * Cin + c (tap-major, channel-minor).
    """
    B, Cin, H, W = x_nchw.shape
    p = dilation
    xp = jnp.pad(x_nchw, ((0, 0), (0, 0), (p, p), (p, p)))
    taps = [xp[:, :, ky * dilation:ky * dilation + H, kx * dilation:kx * dilation + W]
            for ky in range(3) for kx in range(3)]
    t = jnp.stack(taps, axis=1)                          # (B, 9, Cin, H, W)
    return t.reshape(B, 9 * Cin, H * W).astype(jnp.bfloat16)


def skconv_forward(x_nchw, params):
    B, Cin, H, W = x_nchw.shape
    Cout = params["w0"].shape[0]
    d = params["w_fc1"].shape[0]
    HW = H * W
    K = 9 * Cin

    # Wrapper-side im2col, one bf16 operand per branch (K-major, HW lane-dense).
    t0 = _im2col(x_nchw, dilation=1)                     # (B, 9*Cin, HW)
    t1 = _im2col(x_nchw, dilation=2)                     # (B, 9*Cin, HW)

    def conv_w(w, bn_scale):
        # Fold BN scale in f32, then (Cout, Cin, 3, 3) -> (Cout, 9*Cin) with
        # K index (ky*3+kx)*Cin + c, matching the im2col ordering; bf16 last.
        w = w * bn_scale[:, None, None, None]
        return jnp.transpose(w, (0, 2, 3, 1)).reshape(Cout, K).astype(jnp.bfloat16)

    w0 = conv_w(params["w0"], params["sc0"])
    w1 = conv_w(params["w1"], params["sc1"])

    def col(v):
        return v.reshape(-1, 1).astype(jnp.float32)

    b0, b1 = col(params["b0"]), col(params["b1"])
    scf1, bf1 = col(params["sc_fc1"]), col(params["b_fc1"])
    wf1 = params["w_fc1"].astype(jnp.bfloat16)           # (d, Cout)
    wf2 = params["w_fc2"].astype(jnp.bfloat16)           # (M*Cout, d)

    def const(shape):
        return pl.BlockSpec(shape, lambda b: (0,) * len(shape))

    kernel = functools.partial(_skconv_kernel, Cout=Cout, HW=HW)
    v = pl.pallas_call(
        kernel,
        out_shape=jax.ShapeDtypeStruct((B, Cout, HW), jnp.float32),
        grid=(B,),
        in_specs=[
            pl.BlockSpec((1, K, HW), lambda b: (b, 0, 0)),
            pl.BlockSpec((1, K, HW), lambda b: (b, 0, 0)),
            const((Cout, K)), const((Cout, 1)),
            const((Cout, K)), const((Cout, 1)),
            const((d, Cout)), const((d, 1)), const((d, 1)),
            const((M * Cout, d)),
        ],
        out_specs=pl.BlockSpec((1, Cout, HW), lambda b: (b, 0, 0)),
        compiler_params=pltpu.CompilerParams(
            dimension_semantics=("parallel",),
            vmem_limit_bytes=32 * 1024 * 1024),
    )(t0, t1, w0, b0, w1, b1, wf1, scf1, bf1, wf2)

    # Output is already (B, Cout, H*W) == NCHW order: reshape only, no transpose.
    return v.reshape(B, Cout, H, W)


def skconv_reference(x_nchw, params):
    # Pure-JAX reference mirroring the PyTorch forward (inference-mode BN), f32.
    B = x_nchw.shape[0]
    Cout = params["w0"].shape[0]
    outs = []
    for i, (w, sc, bb) in enumerate([(params["w0"], params["sc0"], params["b0"]),
                                     (params["w1"], params["sc1"], params["b1"])]):
        dil = 1 + i
        y = lax.conv_general_dilated(
            x_nchw, w, window_strides=(1, 1),
            padding=[(dil, dil), (dil, dil)],
            rhs_dilation=(dil, dil),
            dimension_numbers=("NCHW", "OIHW", "NCHW"),
            precision=lax.Precision.HIGHEST)
        y = jnp.maximum(y * sc[None, :, None, None] + bb[None, :, None, None], 0.0)
        outs.append(y)
    U = outs[0] + outs[1]
    s = U.mean(axis=(2, 3))                                           # (B, Cout)
    z = jnp.maximum(s @ params["w_fc1"].T * params["sc_fc1"] + params["b_fc1"], 0.0)
    ab = (z @ params["w_fc2"].T).reshape(B, M, Cout)
    ab = jax.nn.softmax(ab, axis=1)
    return outs[0] * ab[:, 0][:, :, None, None] + outs[1] * ab[:, 1][:, :, None, None]


if __name__ == "__main__":
    B, Cin, H, W = 2, 16, 16, 16
    Cout, r, L = 32, 16, 32
    d = max(Cin // r, L)
    eps = 1e-5

    key = jax.random.PRNGKey(0)
    k_x, k_w0, k_w1, k_f1, k_f2 = jax.random.split(key, 5)
    x = jax.random.normal(k_x, (B, Cin, H, W), jnp.float32)

    # Deterministic parameter init (same shapes as the PyTorch module).
    # BatchNorm layers are in inference mode with default stats
    # (mean=0, var=1, gamma=1, beta=0), folded into scale/bias.
    bn_scale = float(1.0 / np.sqrt(1.0 + eps))
    params = {
        "w0": 0.1 * jax.random.normal(k_w0, (Cout, Cin, 3, 3), jnp.float32),
        "w1": 0.1 * jax.random.normal(k_w1, (Cout, Cin, 3, 3), jnp.float32),
        "sc0": jnp.full((Cout,), bn_scale, jnp.float32),
        "b0": jnp.zeros((Cout,), jnp.float32),
        "sc1": jnp.full((Cout,), bn_scale, jnp.float32),
        "b1": jnp.zeros((Cout,), jnp.float32),
        "w_fc1": 0.1 * jax.random.normal(k_f1, (d, Cout), jnp.float32),
        "sc_fc1": jnp.full((d,), bn_scale, jnp.float32),
        "b_fc1": jnp.zeros((d,), jnp.float32),
        "w_fc2": 0.1 * jax.random.normal(k_f2, (Cout * M, d), jnp.float32),
    }

    v = jax.jit(skconv_forward)(x, params)
    v = jax.block_until_ready(v)

    v_ref = skconv_reference(x, params)
    assert v.shape == (B, Cout, H, W)
    # bf16 MXU inputs (f32 accumulation) + approx reciprocal -> relaxed tolerance
    # against the f32 HIGHEST-precision reference.
    np.testing.assert_allclose(np.asarray(v), np.asarray(v_ref), rtol=2e-2, atol=2e-2)
    print("KERNEL_OK")
</pallas_src>

<mosaic_0001>
module attributes {stable_mosaic.version = 11 : i64} {
  func.func @_skconv_kernel(%arg0: i32, %arg1: memref<1x144x256xbf16, #tpu.memory_space<vmem>>, %arg2: memref<1x144x256xbf16, #tpu.memory_space<vmem>>, %arg3: memref<32x144xbf16, #tpu.memory_space<vmem>>, %arg4: memref<32x1xf32, #tpu.memory_space<vmem>>, %arg5: memref<32x144xbf16, #tpu.memory_space<vmem>>, %arg6: memref<32x1xf32, #tpu.memory_space<vmem>>, %arg7: memref<32x32xbf16, #tpu.memory_space<vmem>>, %arg8: memref<32x1xf32, #tpu.memory_space<vmem>>, %arg9: memref<32x1xf32, #tpu.memory_space<vmem>>, %arg10: memref<64x32xbf16, #tpu.memory_space<vmem>>, %arg11: memref<1x32x256xf32, #tpu.memory_space<vmem>>) attributes {dimension_semantics = [#tpu.dimension_semantics<parallel>], iteration_bounds = array<i64: 2>, scalar_prefetch = 0 : i64, scratch_operands = 0 : i64, tpu.core_type = #tpu.core_type<tc>, window_params = [{transform_indices = @transform_0, window_bounds = array<i64: 1, 144, 256>}, {transform_indices = @transform_1, window_bounds = array<i64: 1, 144, 256>}, {pipeline_mode = #tpu.pipeline_mode<synchronous>, transform_indices = @transform_2, window_bounds = array<i64: 32, 144>}, {pipeline_mode = #tpu.pipeline_mode<synchronous>, transform_indices = @transform_3, window_bounds = array<i64: 32, 1>}, {pipeline_mode = #tpu.pipeline_mode<synchronous>, transform_indices = @transform_4, window_bounds = array<i64: 32, 144>}, {pipeline_mode = #tpu.pipeline_mode<synchronous>, transform_indices = @transform_5, window_bounds = array<i64: 32, 1>}, {pipeline_mode = #tpu.pipeline_mode<synchronous>, transform_indices = @transform_6, window_bounds = array<i64: 32, 32>}, {pipeline_mode = #tpu.pipeline_mode<synchronous>, transform_indices = @transform_7, window_bounds = array<i64: 32, 1>}, {pipeline_mode = #tpu.pipeline_mode<synchronous>, transform_indices = @transform_8, window_bounds = array<i64: 32, 1>}, {pipeline_mode = #tpu.pipeline_mode<synchronous>, transform_indices = @transform_9, window_bounds = array<i64: 64, 32>}, {transform_indices = @transform_10, window_bounds = array<i64: 1, 32, 256>}]} {
    %c0 = arith.constant 0 : index
    %c0_0 = arith.constant 0 : index
    %0 = vector.load %arg3[%c0, %c0_0] : memref<32x144xbf16, #tpu.memory_space<vmem>>, vector<32x144xbf16>
    %c0_1 = arith.constant 0 : index
    %c0_2 = arith.constant 0 : index
    %c0_3 = arith.constant 0 : index
    %1 = vector.load %arg1[%c0_1, %c0_2, %c0_3] : memref<1x144x256xbf16, #tpu.memory_space<vmem>>, vector<1x144x256xbf16>
    %2 = vector.shape_cast %1 : vector<1x144x256xbf16> to vector<144x256xbf16>
    %cst = arith.constant dense<0.000000e+00> : vector<32x256xf32>
    %3 = tpu.matmul %0, %2, %cst {dimension_numbers = #tpu.dot_dimension_numbers<[1], [0], [0], [1], [0, 0, 1, 1], [], []>} : vector<32x144xbf16>, vector<144x256xbf16>, vector<32x256xf32> -> vector<32x256xf32>
    %c0_4 = arith.constant 0 : index
    %c0_5 = arith.constant 0 : index
    %4 = vector.load %arg5[%c0_4, %c0_5] : memref<32x144xbf16, #tpu.memory_space<vmem>>, vector<32x144xbf16>
    %c0_6 = arith.constant 0 : index
    %c0_7 = arith.constant 0 : index
    %c0_8 = arith.constant 0 : index
    %5 = vector.load %arg2[%c0_6, %c0_7, %c0_8] : memref<1x144x256xbf16, #tpu.memory_space<vmem>>, vector<1x144x256xbf16>
    %6 = vector.shape_cast %5 : vector<1x144x256xbf16> to vector<144x256xbf16>
    %cst_9 = arith.constant dense<0.000000e+00> : vector<32x256xf32>
    %7 = tpu.matmul %4, %6, %cst_9 {dimension_numbers = #tpu.dot_dimension_numbers<[1], [0], [0], [1], [0, 0, 1, 1], [], []>} : vector<32x144xbf16>, vector<144x256xbf16>, vector<32x256xf32> -> vector<32x256xf32>
    %c0_10 = arith.constant 0 : index
    %c0_11 = arith.constant 0 : index
    %8 = vector.load %arg4[%c0_10, %c0_11] : memref<32x1xf32, #tpu.memory_space<vmem>>, vector<32x1xf32>
    %9 = vector.broadcast %8 : vector<32x1xf32> to vector<32x256xf32>
    %10 = arith.addf %3, %9 : vector<32x256xf32>
    %cst_12 = arith.constant 0.000000e+00 : f32
    %11 = vector.broadcast %cst_12 : f32 to vector<32x256xf32>
    %12 = arith.maximumf %10, %11 : vector<32x256xf32>
    %c0_13 = arith.constant 0 : index
    %c0_14 = arith.constant 0 : index
    %13 = vector.load %arg6[%c0_13, %c0_14] : memref<32x1xf32, #tpu.memory_space<vmem>>, vector<32x1xf32>
    %14 = vector.broadcast %13 : vector<32x1xf32> to vector<32x256xf32>
    %15 = arith.addf %7, %14 : vector<32x256xf32>
    %cst_15 = arith.constant 0.000000e+00 : f32
    %16 = vector.broadcast %cst_15 : f32 to vector<32x256xf32>
    %17 = arith.maximumf %15, %16 : vector<32x256xf32>
    %18 = arith.addf %12, %17 : vector<32x256xf32>
    %cst_16 = arith.constant dense<0.000000e+00> : vector<32xf32>
    %19 = vector.multi_reduction <add>, %18, %cst_16 [1] : vector<32x256xf32> to vector<32xf32>
    %20 = vector.shape_cast %19 : vector<32xf32> to vector<32x1xf32>
    %cst_17 = arith.constant 3.906250e-03 : f32
    %21 = vector.broadcast %cst_17 : f32 to vector<32x1xf32>
    %22 = arith.mulf %20, %21 : vector<32x1xf32>
    %23 = vector.shape_cast %22 : vector<32x1xf32> to vector<32x1xf32>
    %24 = vector.broadcast %23 : vector<32x1xf32> to vector<32x128xf32>
    %25 = arith.truncf %24 : vector<32x128xf32> to vector<32x128xbf16>
    %c0_18 = arith.constant 0 : index
    %c0_19 = arith.constant 0 : index
    %26 = vector.load %arg7[%c0_18, %c0_19] : memref<32x32xbf16, #tpu.memory_space<vmem>>, vector<32x32xbf16>
    %cst_20 = arith.constant dense<0.000000e+00> : vector<32x128xf32>
    %27 = tpu.matmul %26, %25, %cst_20 {dimension_numbers = #tpu.dot_dimension_numbers<[1], [0], [0], [1], [0, 0, 1, 1], [], []>} : vector<32x32xbf16>, vector<32x128xbf16>, vector<32x128xf32> -> vector<32x128xf32>
    %c0_21 = arith.constant 0 : index
    %c0_22 = arith.constant 0 : index
    %28 = vector.load %arg8[%c0_21, %c0_22] : memref<32x1xf32, #tpu.memory_space<vmem>>, vector<32x1xf32>
    %29 = vector.broadcast %28 : vector<32x1xf32> to vector<32x128xf32>
    %30 = arith.mulf %27, %29 : vector<32x128xf32>
    %c0_23 = arith.constant 0 : index
    %c0_24 = arith.constant 0 : index
    %31 = vector.load %arg9[%c0_23, %c0_24] : memref<32x1xf32, #tpu.memory_space<vmem>>, vector<32x1xf32>
    %32 = vector.broadcast %31 : vector<32x1xf32> to vector<32x128xf32>
    %33 = arith.addf %30, %32 : vector<32x128xf32>
    %cst_25 = arith.constant 0.000000e+00 : f32
    %34 = vector.broadcast %cst_25 : f32 to vector<32x128xf32>
    %35 = arith.maximumf %33, %34 : vector<32x128xf32>
    %c0_26 = arith.constant 0 : index
    %c0_27 = arith.constant 0 : index
    %36 = vector.load %arg10[%c0_26, %c0_27] : memref<64x32xbf16, #tpu.memory_space<vmem>>, vector<64x32xbf16>
    %37 = arith.truncf %35 : vector<32x128xf32> to vector<32x128xbf16>
    %cst_28 = arith.constant dense<0.000000e+00> : vector<64x128xf32>
    %38 = tpu.matmul %36, %37, %cst_28 {dimension_numbers = #tpu.dot_dimension_numbers<[1], [0], [0], [1], [0, 0, 1, 1], [], []>} : vector<64x32xbf16>, vector<32x128xbf16>, vector<64x128xf32> -> vector<64x128xf32>
    %39 = vector.extract_strided_slice %38 {offsets = [0, 0], sizes = [32, 128], strides = [1, 1]} : vector<64x128xf32> to vector<32x128xf32>
    %40 = vector.extract_strided_slice %38 {offsets = [32, 0], sizes = [32, 128], strides = [1, 1]} : vector<64x128xf32> to vector<32x128xf32>
    %41 = arith.maximumf %39, %40 : vector<32x128xf32>
    %42 = arith.subf %39, %41 : vector<32x128xf32>
    %43 = math.exp %42 : vector<32x128xf32>
    %44 = arith.subf %40, %41 : vector<32x128xf32>
    %45 = math.exp %44 : vector<32x128xf32>
    %46 = arith.addf %43, %45 : vector<32x128xf32>
    %47 = tpu.reciprocal %46 {approx = true} : vector<32x128xf32> -> vector<32x128xf32>
    %48 = arith.mulf %43, %47 : vector<32x128xf32>
    %49 = vector.extract_strided_slice %48 {offsets = [0, 0], sizes = [32, 1], strides = [1, 1]} : vector<32x128xf32> to vector<32x1xf32>
    %50 = arith.mulf %45, %47 : vector<32x128xf32>
    %51 = vector.extract_strided_slice %50 {offsets = [0, 0], sizes = [32, 1], strides = [1, 1]} : vector<32x128xf32> to vector<32x1xf32>
    %52 = vector.broadcast %49 : vector<32x1xf32> to vector<32x256xf32>
    %53 = arith.mulf %12, %52 : vector<32x256xf32>
    %54 = vector.broadcast %51 : vector<32x1xf32> to vector<32x256xf32>
    %55 = arith.mulf %17, %54 : vector<32x256xf32>
    %56 = arith.addf %53, %55 : vector<32x256xf32>
    %c0_29 = arith.constant 0 : index
    %c0_30 = arith.constant 0 : index
    %c0_31 = arith.constant 0 : index
    %57 = vector.load %arg11[%c0_29, %c0_30, %c0_31] : memref<1x32x256xf32, #tpu.memory_space<vmem>>, vector<1x32x256xf32>
    %58 = vector.shape_cast %57 : vector<1x32x256xf32> to vector<32x256xf32>
    %59 = vector.shape_cast %56 : vector<32x256xf32> to vector<1x32x256xf32>
    tpu.vector_store %arg11[%c0_29, %c0_30, %c0_31], %59 {strides = array<i32>} : memref<1x32x256xf32, #tpu.memory_space<vmem>>, vector<1x32x256xf32>,
    return
  }
  func.func @transform_0(%arg0: i32) -> (i32, i32, i32) {
    %c0_i32 = arith.constant 0 : i32
    %c0_i32_0 = arith.constant 0 : i32
    %c0_i32_1 = arith.constant 0 : i32
    return %arg0, %c0_i32, %c0_i32_0 : i32, i32, i32
  }
  func.func @transform_1(%arg0: i32) -> (i32, i32, i32) {
    %c0_i32 = arith.constant 0 : i32
    %c0_i32_0 = arith.constant 0 : i32
    %c0_i32_1 = arith.constant 0 : i32
    return %arg0, %c0_i32, %c0_i32_0 : i32, i32, i32
  }
  func.func @transform_2(%arg0: i32) -> (i32, i32) {
    %c0_i32 = arith.constant 0 : i32
    %c0_i32_0 = arith.constant 0 : i32
    %c0_i32_1 = arith.constant 0 : i32
    return %c0_i32, %c0_i32_0 : i32, i32
  }
  func.func @transform_3(%arg0: i32) -> (i32, i32) {
    %c0_i32 = arith.constant 0 : i32
    %c0_i32_0 = arith.constant 0 : i32
    %c0_i32_1 = arith.constant 0 : i32
    return %c0_i32, %c0_i32_0 : i32, i32
  }
  func.func @transform_4(%arg0: i32) -> (i32, i32) {
    %c0_i32 = arith.constant 0 : i32
    %c0_i32_0 = arith.constant 0 : i32
    %c0_i32_1 = arith.constant 0 : i32
    return %c0_i32, %c0_i32_0 : i32, i32
  }
  func.func @transform_5(%arg0: i32) -> (i32, i32) {
    %c0_i32 = arith.constant 0 : i32
    %c0_i32_0 = arith.constant 0 : i32
    %c0_i32_1 = arith.constant 0 : i32
    return %c0_i32, %c0_i32_0 : i32, i32
  }
  func.func @transform_6(%arg0: i32) -> (i32, i32) {
    %c0_i32 = arith.constant 0 : i32
    %c0_i32_0 = arith.constant 0 : i32
    %c0_i32_1 = arith.constant 0 : i32
    return %c0_i32, %c0_i32_0 : i32, i32
  }
  func.func @transform_7(%arg0: i32) -> (i32, i32) {
    %c0_i32 = arith.constant 0 : i32
    %c0_i32_0 = arith.constant 0 : i32
    %c0_i32_1 = arith.constant 0 : i32
    return %c0_i32, %c0_i32_0 : i32, i32
  }
  func.func @transform_8(%arg0: i32) -> (i32, i32) {
    %c0_i32 = arith.constant 0 : i32
    %c0_i32_0 = arith.constant 0 : i32
    %c0_i32_1 = arith.constant 0 : i32
    return %c0_i32, %c0_i32_0 : i32, i32
  }
  func.func @transform_9(%arg0: i32) -> (i32, i32) {
    %c0_i32 = arith.constant 0 : i32
    %c0_i32_0 = arith.constant 0 : i32
    %c0_i32_1 = arith.constant 0 : i32
    return %c0_i32, %c0_i32_0 : i32, i32
  }
  func.func @transform_10(%arg0: i32) -> (i32, i32, i32) {
    %c0_i32 = arith.constant 0 : i32
    %c0_i32_0 = arith.constant 0 : i32
    %c0_i32_1 = arith.constant 0 : i32
    return %arg0, %c0_i32, %c0_i32_0 : i32, i32, i32
  }
}

</mosaic_0001>

<bundles_post_ra>
// kernel: skconv_forward.1
= control target key start
LH: loop header
LB: loop body
LE: loop exit
PB: predicated region body
PF: predicated region fallthrough
CT: control target
= control target key end

     0   :  { %s1630_s13 = smov 0   ;;  %s2004_s0 = inlined_call_operand.vmem [shape: bf16[2,144,256], index: 0, kind: input, shape index: {}]   ;;  %s2005_s1 = inlined_call_operand.vmem [shape: bf16[2,144,256], index: 1, kind: input, shape index: {}]   ;;  %s2006_s2 = inlined_call_operand.vmem [shape: bf16[32,144], index: 2, kind: input, shape index: {}]   ;;  %s2007_s3 = inlined_call_operand.vmem [shape: f32[32,1], index: 3, kind: input, shape index: {}]   ;;  %s2008_s4 = inlined_call_operand.vmem [shape: bf16[32,144], index: 4, kind: input, shape index: {}]   ;;  %s2009_s5 = inlined_call_operand.vmem [shape: f32[32,1], index: 5, kind: input, shape index: {}]   ;;  %s2010_s6 = inlined_call_operand.vmem [shape: bf16[32,32], index: 6, kind: input, shape index: {}]   ;;  %s2011_s7 = inlined_call_operand.vmem [shape: f32[32,1], index: 7, kind: input, shape index: {}]   ;;  %s2012_s8 = inlined_call_operand.vmem [shape: f32[32,1], index: 8, kind: input, shape index: {}]   ;;  %s2013_s9 = inlined_call_operand.vmem [shape: bf16[64,32], index: 9, kind: input, shape index: {}]   ;;  %s2014_s10 = inlined_call_operand.vmem [shape: f32[2,32,256], index: 10, kind: output, shape index: {}]  }
   0x1 LB: > { %s1250_s14 = sadd.s32 4294967295, %s1572_s13   ;;  %p1254_p0 = scmp.ge.s32.totalorder %s1572_s13, 1  ;;  %s1572_s13 = sphi %s1630_s13, %s20_s13  }
   0x2   : > { %p322_p1 = scmp.lt.s32.totalorder %s1572_s13, 3 }
   0x4   : > { %p323_p2 = pnand %p1254_p0, %p322_p1 }
   0x5   : > { %p365_p3 = scmp.lt.s32.totalorder (!%p323_p2), %s1250_s14, 1 }
   0x6   : > { %326 = sbr.rel (%p323_p2) target bundleno = 879 (0x36f), region = 60 }
   0xb   : > { %s2016_s14 = smov (!%p365_p3, %s1250_s14), 1  ;;  %v1476_v0 = vld [vmem:[%s2006_s2 + $0x4] sm:$0xf]  ;;  %v1263_v1 = vld [vmem:[%s2006_s2 + $0x8] sm:$0xf0]  ;;  %vm557_vm0 = vcmask 130048  }
   0xc   : > { %s1529_s15 = smul.u32 144, %s2016_s14  ;;  %v1666_v15 = vor.u32 %v1476_v0, %v1263_v1  ;;  %v1478_v25 = vld [vmem:[%s2006_s2 + $0x14] sm:$0xf]  ;;  %v1271_v29 = vld [vmem:[%s2006_s2 + $0x18] sm:$0xf0]  ;;  %vm910_vm1 = vcmask 261120  }
   0xd   : > { %v1274_v39 = vor.u32 %v1478_v25, %v1271_v29  ;;  %s1475_s28 = sshll.u32 %s2016_s14, 6 }
   0xe   : > { %s1644_s18 = scalar_lea.vmem %s2004_s0, %s1529_s15  ;;  %s1658_s25 = scalar_lea.vmem %s2005_s1, %s1529_s15 }
   0xf   : > { %v1494_v2 = vld [vmem:[%s1644_s18 + $0x74] sm:$0xf]  ;;  %v1335_v3 = vld [vmem:[%s1644_s18 + $0x78] sm:$0xf0]  ;;  %v1492_v4 = vld [vmem:[%s1644_s18 + $0x64] sm:$0xf]  ;;  %s1967_s11 = scalar_lea.vmem %s2014_s10, %s1475_s28 }
  0x10   : > { %v1338_v5 = vor.u32 %v1494_v2, %v1335_v3  ;;  %v1327_v6 = vld [vmem:[%s1644_s18 + $0x68] sm:$0xf0]  ;;  %v1341_v7 = vld [vmem:[%s1644_s18 + $0x80] sm:$0xf]  ;;  %v1497_v8 = vld [vmem:[%s1644_s18 + $0x84] sm:$0xf0] }
  0x11   : > { %v1342_v9 = vor.u32 %v1497_v8, %v1341_v7  ;;  %v1333_v10 = vld [vmem:[%s1644_s18 + $0x70] sm:$0xf]  ;;  %v1495_v11 = vld [vmem:[%s1644_s18 + $0x74] sm:$0xf0]  ;;  %v1330_v12 = vor.u32 %v1492_v4, %v1327_v6  ;;  %v1490_v14 = vld [vmem:[%s1644_s18 + $0x54] sm:$0xf] }
  0x12   : > { %602 = vmatpush.bf16.msra.mxu2 %v1338_v5  ;;  %v1334_v13 = vor.u32 %v1495_v11, %v1333_v10  ;;  %v1425_v16 = vld [vmem:[%s1658_s25 + $0x70] sm:$0xf]  ;;  %v1517_v17 = vld [vmem:[%s1658_s25 + $0x74] sm:$0xf0]  ;;  %v1319_v18 = vld [vmem:[%s1644_s18 + $0x58] sm:$0xf0] }
  0x13   : > { %590 = vmatpush.bf16.msra.mxu1 %v1342_v9  ;;  %v1426_v19 = vor.u32 %v1517_v17, %v1425_v16  ;;  %v1325_v20 = vld [vmem:[%s1644_s18 + $0x60] sm:$0xf]  ;;  %v1493_v21 = vld [vmem:[%s1644_s18 + $0x64] sm:$0xf0]  ;;  %v1317_v27 = vld [vmem:[%s1644_s18 + $0x50] sm:$0xf]  ;;  %v1322_v30 = vor.u32 %v1490_v14, %v1319_v18 }
  0x14   : > { %564 = vmatpush.bf16.msra.mxu0 %v1334_v13  ;;  %v1326_v22 = vor.u32 %v1493_v21, %v1325_v20  ;;  %v1417_v23 = vld [vmem:[%s1658_s25 + $0x60] sm:$0xf]  ;;  %v1515_v24 = vld [vmem:[%s1658_s25 + $0x64] sm:$0xf0]  ;;  %v1491_v28 = vld [vmem:[%s1644_s18 + $0x54] sm:$0xf0] }
  0x15   : > { %v1418_v26 = vor.u32 %v1515_v24, %v1417_v23  ;;  %v1488_v31 = vld [vmem:[%s1644_s18 + $0x44] sm:$0xf]  ;;  %v1343_v33 = vld [vmem:[%s1644_s18 + $0x88] sm:$0xf0]  ;;  %v1409_v36 = vld [vmem:[%s1658_s25 + $0x50] sm:$0xf]  ;;  %v1318_v38 = vor.u32 %v1491_v28, %v1317_v27 }
  0x16   : > { %603 = vmatpush.bf16.msra.mxu2 %v1330_v12  ;;  %1347 = vmatmul.msk.bf16.vlgmr.msra.gmra.mxu1 %vm557_vm0, %v1666_v15  ;;  %v1496_v32 = vld [vmem:[%s1644_s18 + $0x84] sm:$0xf]  ;;  %v1311_v34 = vld [vmem:[%s1644_s18 + $0x48] sm:$0xf0]  ;;  %v1513_v37 = vld [vmem:[%s1658_s25 + $0x54] sm:$0xf0] }
  0x17   : > { %786 = vmatpush.bf16.msrb.mxu1 %v1426_v19  ;;  %v1689_v35 = vor.u32 %v1496_v32, %v1343_v33  ;;  %v1410_v40 = vor.u32 %v1513_v37, %v1409_v36  ;;  %v1309_v41 = vld [vmem:[%s1644_s18 + $0x40] sm:$0xf]  ;;  %v1489_v42 = vld [vmem:[%s1644_s18 + $0x44] sm:$0xf0]  ;;  %v1314_v43 = vor.u32 %v1488_v31, %v1311_v34  ;;  %v1486_v46 = vld [vmem:[%s1644_s18 + $0x34] sm:$0xf] }
  0x18   : > { %565 = vmatpush.bf16.msra.mxu0 %v1326_v22  ;;  %v1401_v44 = vld [vmem:[%s1658_s25 + $0x40] sm:$0xf]  ;;  %v1511_v45 = vld [vmem:[%s1658_s25 + $0x44] sm:$0xf0]  ;;  %v1303_v47 = vld [vmem:[%s1644_s18 + $0x38] sm:$0xf0]  ;;  %v1310_v48 = vor.u32 %v1489_v42, %v1309_v41 }
  0x19   : > { %1526 = vmatpush.bf16.msra.mxu3 %v1689_v35  ;;  %v1402_v49 = vor.u32 %v1511_v45, %v1401_v44  ;;  %v1301_v50 = vld [vmem:[%s1644_s18 + $0x30] sm:$0xf]  ;;  %v1487_v51 = vld [vmem:[%s1644_s18 + $0x34] sm:$0xf0]  ;;  %v1306_v52 = vor.u32 %v1486_v46, %v1303_v47  ;;  %v1484_v53 = vld [vmem:[%s1644_s18 + $0x24] sm:$0xf] }
  0x1a   : > { %604 = vmatpush.bf16.msra.mxu2 %v1322_v30  ;;  %v1393_v54 = vld [vmem:[%s1658_s25 + $0x30] sm:$0xf]  ;;  %v1509_v55 = vld [vmem:[%s1658_s25 + $0x34] sm:$0xf0]  ;;  %v1295_v56 = vld [vmem:[%s1644_s18 + $0x28] sm:$0xf0]  ;;  %v1302_v59 = vor.u32 %v1487_v51, %v1301_v50 }
  0x1b   : > { %787 = vmatpush.bf16.msrb.mxu1 %v1418_v26  ;;  %v1433_v57 = vld [vmem:[%s1658_s25 + $0x80] sm:$0xf]  ;;  %v1519_v58 = vld [vmem:[%s1658_s25 + $0x84] sm:$0xf0]  ;;  %v1394_v61 = vor.u32 %v1509_v55, %v1393_v54  ;;  %v1298_v0 = vor.u32 %v1484_v53, %v1295_v56  ;;  %v1482_v3 = vld [vmem:[%s1644_s18 + $0x14] sm:$0xf] }
  0x1c   : > { %566 = vmatpush.bf16.msra.mxu0 %v1318_v38  ;;  %1350 = vmatmul.msk.bf16.vlgmr.msra.gmra.mxu3 %vm557_vm0, %v1274_v39  ;;  %v1434_v60 = vor.u32 %v1519_v58, %v1433_v57  ;;  %v1293_v62 = vld [vmem:[%s1644_s18 + $0x20] sm:$0xf]  ;;  %v1485_v63 = vld [vmem:[%s1644_s18 + $0x24] sm:$0xf0]  ;;  %v1287_v4 = vld [vmem:[%s1644_s18 + $0x18] sm:$0xf0] }
  0x1d   : > { %v1385_v1 = vld [vmem:[%s1658_s25 + $0x20] sm:$0xf]  ;;  %v1507_v2 = vld [vmem:[%s1658_s25 + $0x24] sm:$0xf0]  ;;  %v1294_v5 = vor.u32 %v1485_v63, %v1293_v62  ;;  %v1285_v6 = vld [vmem:[%s1644_s18 + $0x10] sm:$0xf]  ;;  %v1290_v14 = vor.u32 %v1482_v3, %v1287_v4 }
  0x1e   : > { %605 = vmatpush.bf16.msra.mxu2 %v1314_v43  ;;  %812 = vmatpush.bf16.msrb.mxu3 %v1434_v60  ;;  %v1574_v7 = vmov 0   ;;  %v650_v8 = vld [vmem:[%s2009_s5 + $0x10] sm:$0xff]  ;;  %v1386_v10 = vor.u32 %v1507_v2, %v1385_v1  ;;  %v1483_v11 = vld [vmem:[%s1644_s18 + $0x14] sm:$0xf0]  ;;  %v1498_v12 = vld [vmem:[%s2008_s4 + $0x4] sm:$0xf] }
  0x1f   : > { %788 = vmatpush.bf16.msrb.mxu1 %v1410_v40  ;;  %1540 = vset.pattern.permute.xlu1 %v1574_v7  ;;  %v427_v9 = vld [vmem:[%s2007_s3 + $0x10] sm:$0xff]  ;;  %v1355_v13 = vld [vmem:[%s2008_s4 + $0x8] sm:$0xf0]  ;;  %v1505_v17 = vld [vmem:[%s1658_s25 + $0x14] sm:$0xf0]  ;;  %v1286_v20 = vor.u32 %v1483_v11, %v1285_v6 }
  0x20   : > { %567 = vmatpush.bf16.msra.mxu0 %v1310_v48  ;;  %1539 = vset.pattern.permute.xlu0 %v1574_v7  ;;  %v1377_v16 = vld [vmem:[%s1658_s25 + $0x10] sm:$0xf]  ;;  %v1480_v18 = vld [vmem:[%s1644_s18 + $0x4] sm:$0xf]  ;;  %v1279_v19 = vld [vmem:[%s1644_s18 + $0x8] sm:$0xf0]  ;;  %v1734_v21 = vor.u32 %v1498_v12, %v1355_v13 }
  0x21   : > { %664 = vperm.xlu1 %1540, %v650_v8   ;;  %441 = vperm.xlu0 %1539, %v427_v9   ;;  %v1261_v22 = vld [vmem:[%s2006_s2] sm:$0xf]  ;;  %v1378_v23 = vor.u32 %v1505_v17, %v1377_v16  ;;  %v1481_v25 = vld [vmem:[%s1644_s18 + $0x4] sm:$0xf0]  ;;  %v1282_v26 = vor.u32 %v1480_v18, %v1279_v19  ;;  %v1516_v30 = vld [vmem:[%s1658_s25 + $0x74] sm:$0xf] }
  0x22   : > { %606 = vmatpush.bf16.msra.mxu2 %v1306_v52  ;;  %1541 = vset.pattern.permute.xlu2 %v1574_v7  ;;  %v1277_v24 = vld [vmem:[%s1644_s18] sm:$0xf]  ;;  %v1477_v27 = vld [vmem:[%s2006_s2 + $0x4] sm:$0xf0]  ;;  %v1427_v31 = vld [vmem:[%s1658_s25 + $0x78] sm:$0xf0] }
  0x23   : > { %789 = vmatpush.bf16.msrb.mxu1 %v1402_v49  ;;  %v1369_v28 = vld [vmem:[%s1658_s25] sm:$0xf]  ;;  %v1503_v29 = vld [vmem:[%s1658_s25 + $0x4] sm:$0xf0]  ;;  %v1278_v32 = vor.u32 %v1481_v25, %v1277_v24  ;;  %v651_v33 = vld [vmem:[%s2009_s5 + $0x18] sm:$0xff]  ;;  %v1262_v36 = vor.u32 %v1477_v27, %v1261_v22  ;;  %v1430_v38 = vor.u32 %v1516_v30, %v1427_v31 }
  0x24   : > { %568 = vmatpush.bf16.msra.mxu0 %v1302_v59  ;;  %v428_v34 = vld [vmem:[%s2007_s3 + $0x18] sm:$0xff]  ;;  %v1370_v37 = vor.u32 %v1503_v29, %v1369_v28  ;;  %v1499_v40 = vld [vmem:[%s2008_s4 + $0x4] sm:$0xf0]  ;;  %v1514_v41 = vld [vmem:[%s1658_s25 + $0x64] sm:$0xf] }
  0x25   : > { %v1419_v42 = vld [vmem:[%s1658_s25 + $0x68] sm:$0xf0]  ;;  %v1512_v45 = vld [vmem:[%s1658_s25 + $0x54] sm:$0xf]  ;;  %v1411_v46 = vld [vmem:[%s1658_s25 + $0x58] sm:$0xf0] }
  0x26   : > { %607 = vmatpush.bf16.msra.mxu2 %v1298_v0  ;;  %1348 = vmatmul.msk.bf16.gmra.mxu1 %vm557_vm0, %v1274_v39  ;;  %v1353_v39 = vld [vmem:[%s2008_s4] sm:$0xf]  ;;  %v1422_v44 = vor.u32 %v1514_v41, %v1419_v42  ;;  %v1518_v48 = vld [vmem:[%s1658_s25 + $0x84] sm:$0xf]  ;;  %v1435_v49 = vld [vmem:[%s1658_s25 + $0x88] sm:$0xf0]  ;;  %v1414_v54 = vor.u32 %v1512_v45, %v1411_v46 }
  0x27   : > { %790 = vmatpush.bf16.msrb.mxu1 %v1394_v61  ;;  %v1354_v43 = vor.u32 %v1499_v40, %v1353_v39  ;;  %v425_v47 = vld [vmem:[%s2007_s3] sm:$0xff]  ;;  %v1438_v51 = vor.u32 %v1518_v48, %v1435_v49  ;;  %v1500_v52 = vld [vmem:[%s2008_s4 + $0x14] sm:$0xf]  ;;  %v1363_v53 = vld [vmem:[%s2008_s4 + $0x18] sm:$0xf0] }
  0x28   : > { %569 = vmatpush.bf16.msra.mxu0 %v1294_v5  ;;  %v648_v50 = vld [vmem:[%s2009_s5] sm:$0xff]  ;;  %431 = vperm.xlu2 %1541, %v425_v47   ;;  %v1403_v56 = vld [vmem:[%s1658_s25 + $0x48] sm:$0xf0]  ;;  %v1366_v57 = vor.u32 %v1500_v52, %v1363_v53  ;;  %v1269_v58 = vld [vmem:[%s2006_s2 + $0x10] sm:$0xf] }
  0x29   : > { %669 = vperm.xlu1 %1540, %v651_v33   ;;  %446 = vperm.xlu0 %1539, %v428_v34   ;;  %v1510_v55 = vld [vmem:[%s1658_s25 + $0x44] sm:$0xf]  ;;  %v1479_v59 = vld [vmem:[%s2006_s2 + $0x14] sm:$0xf0]  ;;  %v1508_v61 = vld [vmem:[%s1658_s25 + $0x34] sm:$0xf] }
  0x2a   : > { %608 = vmatpush.bf16.msra.mxu2 %v1290_v14  ;;  %v1406_v60 = vor.u32 %v1510_v55, %v1403_v56  ;;  %v1395_v62 = vld [vmem:[%s1658_s25 + $0x38] sm:$0xf0]  ;;  %v1270_v63 = vor.u32 %v1479_v59, %v1269_v58  ;;  %v1361_v1 = vld [vmem:[%s2008_s4 + $0x10] sm:$0xf]  ;;  %v1501_v2 = vld [vmem:[%s2008_s4 + $0x14] sm:$0xf0] }
  0x2b   : > { %791 = vmatpush.bf16.msrb.mxu1 %v1386_v10  ;;  %v1398_v0 = vor.u32 %v1508_v61, %v1395_v62  ;;  %v1506_v3 = vld [vmem:[%s1658_s25 + $0x24] sm:$0xf]  ;;  %v1387_v4 = vld [vmem:[%s1658_s25 + $0x28] sm:$0xf0]  ;;  %v1362_v6 = vor.u32 %v1501_v2, %v1361_v1  ;;  %v1504_v8 = vld [vmem:[%s1658_s25 + $0x14] sm:$0xf] }
  0x2c   : > { %570 = vmatpush.bf16.msra.mxu0 %v1286_v20  ;;  %1439 = vmatmul.msk.bf16.vlgmr.msrb.gmra.mxu3 %vm557_vm0, %v1734_v21  ;;  %v426_v5 = vld [vmem:[%s2007_s3 + $0x8] sm:$0xff]  ;;  %v1390_v7 = vor.u32 %v1506_v3, %v1387_v4  ;;  %v1379_v9 = vld [vmem:[%s1658_s25 + $0x18] sm:$0xf0]  ;;  %v1502_v11 = vld [vmem:[%s1658_s25 + $0x4] sm:$0xf] }
  0x2d   : > { %v1382_v10 = vor.u32 %v1504_v8, %v1379_v9  ;;  %v1371_v12 = vld [vmem:[%s1658_s25 + $0x8] sm:$0xf0] }
  0x2e   : > { %609 = vmatpush.bf16.msra.mxu2 %v1282_v26  ;;  %v1374_v13 = vor.u32 %v1502_v11, %v1371_v12 }
  0x2f   : > { %792 = vmatpush.bf16.msrb.mxu1 %v1378_v23 }
  0x30   : > { %571 = vmatpush.bf16.msra.mxu0 %v1278_v32  ;;  %436 = vperm.xlu2 %1541, %v426_v5  }
  0x31   : > { %610 = vmatmul.bf16.vlgmr.msra.gmra.mxu2 %v1262_v36  ;;  %654 = vperm.xlu0 %1539, %v648_v50  }
  0x32   : > { %628 = vmatpush.bf16.msrb.mxu2 %v1689_v35  ;;  %v649_v35 = vld [vmem:[%s2009_s5 + $0x8] sm:$0xff] }
  0x33   : > { %793 = vmatpush.bf16.msrb.mxu1 %v1370_v37  ;;  %572 = vmatmul.bf16.vlgmr.msra.gmra.mxu0 %v1262_v36 }
  0x34   : > { %824 = vmatpush.bf16.msrb.mxu0 %v1430_v38  ;;  %659 = vperm.xlu1 %1540, %v649_v35  }
  0x36   : > { %794 = vmatmul.bf16.vlgmr.msrb.gmra.mxu1 %v1354_v43  ;;  %850 = vmatpush.bf16.msra.mxu2 %v1438_v51 }
  0x38   : > { %825 = vmatpush.bf16.msrb.mxu0 %v1422_v44 }
  0x3c   : > { %826 = vmatpush.bf16.msrb.mxu0 %v1414_v54  ;;  %1440 = vmatmul.msk.bf16.gmra.mxu3 %vm557_vm0, %v1366_v57 }
  0x40   : > { %827 = vmatpush.bf16.msrb.mxu0 %v1406_v60 }
  0x41   : > { %615 = vmatmul.bf16.gmra.mxu2 %v1270_v63 }
  0x43   : > { %577 = vmatmul.bf16.gmra.mxu0 %v1270_v63 }
  0x44   : > { %828 = vmatpush.bf16.msrb.mxu0 %v1398_v0 }
  0x46   : > { %799 = vmatmul.bf16.gmra.mxu1 %v1362_v6 }
  0x48   : > { %829 = vmatpush.bf16.msrb.mxu0 %v1390_v7 }
  0x4c   : > { %830 = vmatpush.bf16.msrb.mxu0 %v1382_v10 }
  0x50   : > { %831 = vmatpush.bf16.msrb.mxu0 %v1374_v13 }
  0x51   : > { %1349 = vmatmul.msk.bf16.vlgmr.msrb.gmra.mxu2 %vm557_vm0, %v1666_v15 }
  0x53   : > { %832 = vmatmul.bf16.vlgmr.msrb.gmra.mxu0 %v1354_v43 }
  0x61   : > { %1441 = vmatmul.msk.bf16.vlgmr.msra.gmra.mxu2 %vm557_vm0, %v1734_v21 }
  0x63   : > { %837 = vmatmul.bf16.gmra.mxu0 %v1362_v6 }
  0x71   : > { %1442 = vmatmul.msk.bf16.gmra.mxu2 %vm557_vm0, %v1366_v57 }
  0x82   : > { %v432_v36 = vpop.permute.xlu2 %431 }
  0x8a   : > { %v437_v5 = vpop.permute.xlu2 %436 }
  0x93   : > { %v592_v14 = vpop.f32.mrf.mxu1  ;;  %v442_v25 = vpop.permute.xlu0 %441 }
  0x94   : > { %v665_v38 = vpop.permute.xlu1 %664 }
  0x9b   : > { %v1815_v18 = vpop.f32.mrf.mxu1  ;;  %v447_v28 = vpop.permute.xlu0 %446 }
  0x9c   : > { %v670_v52 = vpop.permute.xlu1 %669 }
  0x9f   : > { %v635_v23 = vpop.f32.mrf.mxu3 }
  0xa3   : > { %v597_v22 = vpop.f32.mrf.mxu1  ;;  %v655_v33 = vpop.permute.xlu0 %654 }
  0xa6   : > { %v660_v3 = vpop.permute.xlu1 %659 }
  0xa7   : > { %v1821_v21 = vpop.f32.mrf.mxu3 }
  0xab   : > { %v1819_v26 = vpop.f32.mrf.mxu1 }
  0xaf   : > { %v814_v32 = vpop.f32.mrf.mxu3 }
  0xb0   : > { %v573_v16 = vpop.f32.mrf.mxu0 }
  0xb1   : > { %v574_v39 = vadd.f32 %v573_v16, %v432_v36 }
  0xb3   : > { %v795_v30 = vpop.f32.mrf.mxu1  ;;  %v1823_v43 = vadd.f32 %v592_v14, %v574_v39 }
  0xb4   : > { %v611_v17 = vpop.f32.mrf.mxu2  ;;  %v796_v40 = vadd.f32 %v795_v30, %v655_v33 }
  0xb5   : > { %v612_v42 = vadd.f32 %v611_v17, %v432_v36  ;;  %v640_v35 = vmax.f32 %v1823_v43, 0.0 }
  0xb6   : > { %v1825_v44 = vadd.f32 %v814_v32, %v796_v40 }
  0xb7   : > { %v816_v46 = vpop.f32.mrf.mxu3 }
  0xb8   : > { %v575_v20 = vpop.f32.mrf.mxu0  ;;  %v862_v50 = vmax.f32 %v1825_v44, 0.0 }
  0xb9   : > { %v576_v8 = vadd.f32 %v575_v20, %v437_v5 }
  0xba   : > { %v870_v57 = vadd.f32 %v862_v50, %v640_v35 }
  0xbb   : > { %v797_v41 = vpop.f32.mrf.mxu1  ;;  %v1859_v30 = vadd.f32 %v1815_v18, %v576_v8 }
  0xbc   : > { %v1817_v19 = vpop.f32.mrf.mxu2  ;;  %v798_v9 = vadd.f32 %v797_v41, %v660_v3 }
  0xbd   : > { %v642_v39 = vmax.f32 %v1859_v30, 0.0 }
  0xbf   : > { %v819_v61 = vpop.f32.mrf.mxu3 }
  0xc0   : > { %v578_v15 = vpop.f32.mrf.mxu0 }
  0xc1   : > { %v579_v59 = vadd.f32 %v578_v15, %v442_v25 }
  0xc3   : > { %v800_v55 = vpop.f32.mrf.mxu1  ;;  %v1843_v1 = vadd.f32 %v597_v22, %v579_v59  ;;  %v614_v22 = vadd.f32 %v1817_v19, %v437_v5  ;;  %v937_v59 = vld [vmem:[%s2011_s7 + $0x8] sm:$0xff] }
  0xc4   : > { %v616_v24 = vpop.f32.mrf.mxu2  ;;  %v801_v60 = vadd.f32 %v800_v55, %v665_v38 }
  0xc5   : > { %v617_v0 = vadd.f32 %v616_v24, %v442_v25  ;;  %v644_v10 = vmax.f32 %v1843_v1, 0.0 }
  0xc6   : > { %v1845_v2 = vadd.f32 %v819_v61, %v801_v60  ;;  %v939_v60 = vld [vmem:[%s2011_s7 + $0x18] sm:$0xff]  ;;  %v938_v61 = vld [vmem:[%s2011_s7 + $0x10] sm:$0xff] }
  0xc7   : > { %v1847_v6 = vadd.f32 %v635_v23, %v617_v0  ;;  %v821_v24 = vpop.f32.mrf.mxu3  ;;  %v964_v0 = vld [vmem:[%s2012_s8] sm:$0xff] }
  0xc8   : > { %v580_v29 = vpop.f32.mrf.mxu0  ;;  %v866_v11 = vmax.f32 %v1845_v2, 0.0 }
  0xc9   : > { %v581_v13 = vadd.f32 %v580_v29, %v447_v28  ;;  %v645_v25 = vmax.f32 %v1847_v6, 0.0 }
  0xca   : > { %v874_v29 = vadd.f32 %v866_v11, %v644_v10 }
  0xcb   : > { %v802_v4 = vpop.f32.mrf.mxu1  ;;  %v1868_v19 = vadd.f32 %v1819_v26, %v581_v13 }
  0xcc   : > { %v618_v27 = vpop.f32.mrf.mxu2  ;;  %v803_v14 = vadd.f32 %v802_v4, %v670_v52 }
  0xcd   : > { %v619_v23 = vadd.f32 %v618_v27, %v447_v28 }
  0xcf   : > { %v1879_v28 = vadd.f32 %v1821_v21, %v619_v23  ;;  %v1521_v23 = vld [vmem:[%s2010_s6 + $0x8] sm:$0xff] }
  0xd0   : > { %v833_v34 = vpop.f32.mrf.mxu0 }
  0xd1   : > { %v834_v45 = vadd.f32 %v833_v34, %v655_v33  ;;  %v1870_v33 = vadd.f32 %v821_v24, %v803_v14  ;;  %v647_v21 = vmax.f32 %v1879_v28, 0.0  ;;  %v1520_v24 = vld [vmem:[%s2010_s6] sm:$0xff] }
  0xd3   : > { %v868_v41 = vmax.f32 %v1870_v33, 0.0 }
  0xd4   : > { %v630_v31 = vpop.f32.mrf.mxu2 }
  0xd5   : > { %v1827_v47 = vadd.f32 %v630_v31, %v612_v42  ;;  %v1861_v31 = vadd.f32 %v816_v46, %v798_v9 }
  0xd7   : > { %v641_v53 = vmax.f32 %v1827_v47, 0.0  ;;  %v864_v26 = vmax.f32 %v1861_v31, 0.0 }
  0xd8   : > { %v835_v48 = vpop.f32.mrf.mxu0 }
  0xd9   : > { %v836_v16 = vadd.f32 %v835_v48, %v660_v3  ;;  %v965_v3 = vld [vmem:[%s2012_s8 + $0x8] sm:$0xff] }
  0xdc   : > { %v632_v37 = vpop.f32.mrf.mxu2 }
  0xdd   : > { %v1872_v27 = vadd.f32 %v632_v37, %v614_v22  ;;  %v646_v37 = vmax.f32 %v1868_v19, 0.0 }
  0xdf   : > { %v643_v42 = vmax.f32 %v1872_v27, 0.0 }
  0xe0   : > { %v838_v63 = vpop.f32.mrf.mxu0 }
  0xe1   : > { %v839_v7 = vadd.f32 %v838_v63, %v665_v38  ;;  %v936_v63 = vld [vmem:[%s2011_s7] sm:$0xff] }
  0xe4   : > { %v852_v49 = vpop.f32.mrf.mxu2 }
  0xe5   : > { %v1831_v51 = vadd.f32 %v852_v49, %v834_v45  ;;  %v872_v49 = vadd.f32 %v864_v26, %v642_v39 }
  0xe7   : > { %v863_v54 = vmax.f32 %v1831_v51, 0.0 }
  0xe8   : > { %v840_v32 = vpop.f32.mrf.mxu0 }
  0xe9   : > { %v871_v56 = vadd.f32 %v863_v54, %v641_v53  ;;  %v841_v36 = vadd.f32 %v840_v32, %v670_v52  ;;  %v876_v52 = vadd.f32 %v868_v41, %v646_v37 }
  0xeb   : > { %v878_v58 = vadd.f32 %v871_v56, %v870_v57 }
  0xec   : > { %v854_v62 = vpop.f32.mrf.mxu2 }
  0xed   : > { %879 = vadd.xlane.f32.xlu1 %v878_v58  ;;  %v1855_v15 = vadd.f32 %v854_v62, %v836_v16  ;;  %v966_v58 = vld [vmem:[%s2012_s8 + $0x10] sm:$0xff]  ;;  %v967_v62 = vld [vmem:[%s2012_s8 + $0x18] sm:$0xff] }
  0xef   : > { %v865_v34 = vmax.f32 %v1855_v15, 0.0 }
  0xf1   : > { %v873_v46 = vadd.f32 %v865_v34, %v643_v42 }
  0xf3   : > { %v881_v57 = vadd.f32 %v873_v46, %v872_v49 }
  0xf4   : > { %v857_v12 = vpop.f32.mrf.mxu2 }
  0xf5   : > { %v1851_v17 = vadd.f32 %v857_v12, %v839_v7 }
  0xf7   : > { %v867_v20 = vmax.f32 %v1851_v17, 0.0 }
  0xf9   : > { %v875_v18 = vadd.f32 %v867_v20, %v645_v25 }
  0xfb   : > { %v884_v38 = vadd.f32 %v875_v18, %v874_v29 }
  0xfc   : > { %v859_v40 = vpop.f32.mrf.mxu2 }
  0xfd   : > { %v1887_v45 = vadd.f32 %v859_v40, %v841_v36  ;;  %885 = vadd.xlane.f32.xlu2 %v884_v38 }
  0xff   : > { %v869_v48 = vmax.f32 %v1887_v45, 0.0 }
 0x101   : > { %v877_v55 = vadd.f32 %v869_v48, %v647_v21 }
 0x103   : > { %v887_v56 = vadd.f32 %v877_v55, %v876_v52 }
 0x105   : > { %888 = vadd.xlane.f32.xlu0 %v887_v56  ;;  %882 = vadd.xlane.f32.xlu2 %v881_v57 }
 0x106   : > { %980 = vperm.xlu1 %1540, %v966_v58  }
 0x10e   : > { %947 = vperm.xlu1 %1540, %v937_v59  }
 0x119   : > { %957 = vperm.xlu0 %1539, %v939_v60  }
 0x11d   : > { %952 = vperm.xlu2 %1541, %v938_v61  }
 0x121   : > { %985 = vperm.xlu0 %1539, %v967_v62  }
 0x125   : > { %942 = vperm.xlu2 %1541, %v936_v63  }
 0x129   : > { %970 = vperm.xlu0 %1539, %v964_v0  }
 0x12d   : > { %975 = vperm.xlu2 %1541, %v965_v3  }
 0x160   : > { %v880_v12 = vpop.xlane.xlu1 %879 }
 0x161   : > { %v890_v16 = vmul.f32 0.00390625, %v880_v12 }
 0x170   : > { %v886_v4 = vpop.xlane.xlu2 %885 }
 0x171   : > { %v892_v8 = vmul.f32 0.00390625, %v886_v4 }
 0x178   : > { %v889_v5 = vpop.xlane.xlu0 %888  ;;  %v883_v7 = vpop.xlane.xlu2 %882 }
 0x179   : > { %v893_v9 = vmul.f32 0.00390625, %v889_v5  ;;  %v891_v14 = vmul.f32 0.00390625, %v883_v7  ;;  %v981_v38 = vpop.permute.xlu1 %980 }
 0x17b   : > { %v895_v13 = vpack.c.bf16 %v893_v9, %v892_v8  ;;  %v894_v22 = vpack.c.bf16 %v891_v14, %v890_v16  ;;  %v1522_v14 = vld [vmem:[%s2013_s9] sm:$0xff]  ;;  %v1524_v16 = vld [vmem:[%s2013_s9 + $0x10] sm:$0xff] }
 0x17d   : > { %923 = vmatpush.bf16.msra.mxu1 %v895_v13  ;;  %v1523_v13 = vld [vmem:[%s2013_s9 + $0x8] sm:$0xff] }
 0x180   : > { %v953_v32 = vpop.permute.xlu2 %952 }
 0x181   : > { %924 = vmatpush.bf16.msra.mxu1 %v894_v22  ;;  %v948_v55 = vpop.permute.xlu1 %947  ;;  %v1525_v22 = vld [vmem:[%s2013_s9 + $0x18] sm:$0xff] }
 0x184   : > { %1451 = vmatmul.msk.bf16.vlgmr.msra.gmra.mxu1 %vm910_vm1, %v1520_v24 }
 0x188   : > { %v943_v40 = vpop.permute.xlu2 %942 }
 0x18b   : > { %v958_v18 = vpop.permute.xlu0 %957 }
 0x190   : > { %v976_v61 = vpop.permute.xlu2 %975 }
 0x193   : > { %v986_v49 = vpop.permute.xlu0 %985 }
 0x194   : > { %1452 = vmatmul.msk.bf16.gmra.mxu1 %vm910_vm1, %v1521_v23 }
 0x19b   : > { %v971_v0 = vpop.permute.xlu0 %970 }
 0x201   : > { %v926_v29 = vpop.f32.mrf.mxu1 }
 0x202   : > { %v960_v58 = vmul.f32 %v943_v40, %v926_v29 }
 0x204   : > { %v988_v3 = vadd.f32 %v971_v0, %v960_v58 }
 0x206   : > { %v992_v9 = vmax.f32 %v988_v3, 0.0 }
 0x209   : > { %v928_v36 = vpop.f32.mrf.mxu1 }
 0x20a   : > { %v961_v56 = vmul.f32 %v948_v55, %v928_v36 }
 0x20c   : > { %v989_v62 = vadd.f32 %v976_v61, %v961_v56 }
 0x20e   : > { %v993_v7 = vmax.f32 %v989_v62, 0.0 }
 0x210   : > { %v1004_v12 = vpack.c.bf16 %v993_v7, %v992_v9 }
 0x211   : > { %v931_v46 = vpop.f32.mrf.mxu1 }
 0x212   : > { %v962_v52 = vmul.f32 %v953_v32, %v931_v46 }
 0x214   : > { %v990_v59 = vadd.f32 %v981_v38, %v962_v52 }
 0x216   : > { %v994_v4 = vmax.f32 %v990_v59, 0.0 }
 0x219   : > { %v933_v57 = vpop.f32.mrf.mxu1 }
 0x21a   : > { %v963_v60 = vmul.f32 %v958_v18, %v933_v57 }
 0x21c   : > { %v991_v63 = vadd.f32 %v986_v49, %v963_v60 }
 0x21e   : > { %v995_v5 = vmax.f32 %v991_v63, 0.0 }
 0x220   : > { %v1005_v8 = vpack.c.bf16 %v995_v5, %v994_v4 }
 0x222   : > { %1044 = vmatpush.bf16.msra.mxu0 %v1005_v8  ;;  %1527 = vmatpush.bf16.msra.mxu3 %v1005_v8 }
 0x226   : > { %1045 = vmatpush.bf16.msra.mxu0 %v1004_v12  ;;  %1528 = vmatpush.bf16.msra.mxu3 %v1004_v12 }
 0x229   : > { %1470 = vmatmul.msk.bf16.vlgmr.msra.gmra.mxu3 %vm910_vm1, %v1523_v13  ;;  %1469 = vmatmul.msk.bf16.vlgmr.msra.gmra.mxu0 %vm910_vm1, %v1522_v14 }
 0x239   : > { %1471 = vmatmul.msk.bf16.gmra.mxu3 %vm910_vm1, %v1524_v16 }
 0x249   : > { %1472 = vmatmul.msk.bf16.gmra.mxu3 %vm910_vm1, %v1525_v22 }
 0x2a6   : > { %v1047_v29 = vpop.f32.mrf.mxu0 }
 0x2ac   : > { %v1052_v24 = vpop.f32.mrf.mxu3 }
 0x2ae   : > { %v1049_v49 = vpop.f32.mrf.mxu0 }
 0x2b4   : > { %v1054_v23 = vpop.f32.mrf.mxu3 }
 0x2bc   : > { %v1057_v32 = vpop.f32.mrf.mxu3 }
 0x2bd   : > { %v1067_v18 = vmax.f32 %v1047_v29, %v1057_v32 }
 0x2bf   : > { %v1071_v36 = vsub.f32 %v1047_v29, %v1067_v18  ;;  %v1083_v38 = vsub.f32 %v1057_v32, %v1067_v18 }
 0x2c1   : > { %v1075_v40 = vmul.f32 1.442695, %v1071_v36  ;;  %v1087_v46 = vmul.f32 1.442695, %v1083_v38 }
 0x2c3   : > { %1542 = vpow2.f32 %v1075_v40 }
 0x2c4   : > { %1544 = vpow2.f32 %v1087_v46  ;;  %v1059_v52 = vpop.f32.mrf.mxu3 }
 0x2c5   : > { %v1068_v55 = vmax.f32 %v1049_v49, %v1059_v52 }
 0x2c7   : > { %v1072_v56 = vsub.f32 %v1049_v49, %v1068_v55  ;;  %v1084_v57 = vsub.f32 %v1059_v52, %v1068_v55 }
 0x2c9   : > { %v1543_v58 = vpop.eup %1542  ;;  %v1077_v59 = vmul.f32 1.442695, %v1072_v56  ;;  %v1089_v60 = vmul.f32 1.442695, %v1084_v57 }
 0x2ca   : > { %v1545_v61 = vpop.eup %1544 }
 0x2cb   : > { %v1095_v62 = vadd.f32 %v1545_v61, %v1543_v58  ;;  %1546 = vpow2.f32 %v1077_v59 }
 0x2cc   : > { %1548 = vpow2.f32 %v1089_v60  ;;  %v1062_v63 = vpop.f32.mrf.mxu3 }
 0x2cd   : > { %1550 = vrcp.f32 %v1095_v62  ;;  %v1069_v0 = vmax.f32 %v1052_v24, %v1062_v63 }
 0x2cf   : > { %v1073_v3 = vsub.f32 %v1052_v24, %v1069_v0  ;;  %v1085_v4 = vsub.f32 %v1062_v63, %v1069_v0 }
 0x2d1   : > { %v1547_v5 = vpop.eup %1546  ;;  %v1079_v7 = vmul.f32 1.442695, %v1073_v3  ;;  %v1091_v8 = vmul.f32 1.442695, %v1085_v4 }
 0x2d2   : > { %v1549_v9 = vpop.eup %1548 }
 0x2d3   : > { %v1551_v12 = vpop.eup %1550  ;;  %v1096_v13 = vadd.f32 %v1549_v9, %v1547_v5  ;;  %1552 = vpow2.f32 %v1079_v7 }
 0x2d4   : > { %1554 = vpow2.f32 %v1091_v8  ;;  %v1064_v14 = vpop.f32.mrf.mxu3  ;;  %v1107_v16 = vmul.f32 %v1551_v12, %v1545_v61  ;;  %v1103_v22 = vmul.f32 %v1551_v12, %v1543_v58 }
 0x2d5   : > { %1556 = vrcp.f32 %v1096_v13  ;;  %v1070_v29 = vmax.f32 %v1054_v23, %v1064_v14 }
 0x2d6   : > { %1141 = vperm.xlu0 %1539, %v1107_v16   ;;  %1113 = vperm.xlu1 %1540, %v1103_v22  }
 0x2d7   : > { %v1074_v32 = vsub.f32 %v1054_v23, %v1070_v29  ;;  %v1086_v18 = vsub.f32 %v1064_v14, %v1070_v29 }
 0x2d9   : > { %v1553_v36 = vpop.eup %1552  ;;  %v1081_v24 = vmul.f32 1.442695, %v1074_v32  ;;  %v1093_v38 = vmul.f32 1.442695, %v1086_v18 }
 0x2da   : > { %v1555_v40 = vpop.eup %1554 }
 0x2db   : > { %v1557_v46 = vpop.eup %1556  ;;  %v1097_v49 = vadd.f32 %v1555_v40, %v1553_v36  ;;  %1558 = vpow2.f32 %v1081_v24 }
 0x2dc   : > { %1560 = vpow2.f32 %v1093_v38  ;;  %v1104_v52 = vmul.f32 %v1557_v46, %v1547_v5  ;;  %v1108_v61 = vmul.f32 %v1557_v46, %v1549_v9 }
 0x2dd   : > { %1562 = vrcp.f32 %v1097_v49 }
 0x2de   : > { %1118 = vperm.xlu0 %1539, %v1104_v52  }
 0x2e1   : > { %v1559_v55 = vpop.eup %1558 }
 0x2e2   : > { %v1561_v56 = vpop.eup %1560 }
 0x2e3   : > { %v1563_v57 = vpop.eup %1562  ;;  %v1098_v58 = vadd.f32 %v1561_v56, %v1559_v55 }
 0x2e4   : > { %v1105_v59 = vmul.f32 %v1563_v57, %v1553_v36  ;;  %v1109_v63 = vmul.f32 %v1563_v57, %v1555_v40 }
 0x2e5   : > { %1564 = vrcp.f32 %v1098_v58 }
 0x2e6   : > { %1123 = vperm.xlu2 %1541, %v1105_v59  }
 0x2eb   : > { %v1565_v23 = vpop.eup %1564 }
 0x2ec   : > { %v1106_v60 = vmul.f32 %v1565_v23, %v1559_v55  ;;  %v1110_v62 = vmul.f32 %v1565_v23, %v1561_v56 }
 0x2ee   : > { %1128 = vperm.xlu1 %1540, %v1106_v60   ;;  %1146 = vperm.xlu2 %1541, %v1108_v61  }
 0x2ef   : > { %1156 = vperm.xlu0 %1539, %v1110_v62  }
 0x2f6   : > { %1151 = vperm.xlu1 %1540, %v1109_v63  }
 0x340   : > { %v1124_v0 = vpop.permute.xlu2 %1123 }
 0x341   : > { %v1135_v19 = vmul.f32 %v1124_v0, %v644_v10  ;;  %v1136_v28 = vmul.f32 %v1124_v0, %v645_v25 }
 0x348   : > { %v1142_v3 = vpop.permute.xlu0 %1141  ;;  %v1114_v4 = vpop.permute.xlu1 %1113 }
 0x349   : > { %v1159_v5 = vmul.f32 %v1142_v3, %v862_v50  ;;  %v1160_v7 = vmul.f32 %v1142_v3, %v863_v54  ;;  %v1131_v8 = vmul.f32 %v1114_v4, %v640_v35  ;;  %v1132_v9 = vmul.f32 %v1114_v4, %v641_v53  ;;  %v1147_v51 = vpop.permute.xlu2 %1146 }
 0x34a   : > { %v1161_v43 = vmul.f32 %v1147_v51, %v864_v26  ;;  %v1162_v47 = vmul.f32 %v1147_v51, %v865_v34 }
 0x34b   : > { %v1167_v44 = vadd.f32 %v1159_v5, %v1131_v8  ;;  %v1168_v50 = vadd.f32 %v1160_v7, %v1132_v9 }
 0x34d   : > { %1175 = vst [vmem:[%s1967_s11] sm:$0xff] %v1167_v44 }
 0x34e   : > { %1176 = vst [vmem:[%s1967_s11 + $0x8] sm:$0xff] %v1168_v50 }
 0x350   : > { %v1119_v54 = vpop.permute.xlu0 %1118 }
 0x351   : > { %v1133_v35 = vmul.f32 %v1119_v54, %v642_v39  ;;  %v1134_v53 = vmul.f32 %v1119_v54, %v643_v42 }
 0x353   : > { %v1169_v12 = vadd.f32 %v1161_v43, %v1133_v35  ;;  %v1170_v13 = vadd.f32 %v1162_v47, %v1134_v53 }
 0x355   : > { %1177 = vst [vmem:[%s1967_s11 + $0x10] sm:$0xff] %v1169_v12 }
 0x356   : > { %1178 = vst [vmem:[%s1967_s11 + $0x18] sm:$0xff] %v1170_v13 }
 0x360   : > { %v1129_v14 = vpop.permute.xlu1 %1128 }
 0x361   : > { %v1137_v31 = vmul.f32 %v1129_v14, %v646_v37  ;;  %v1138_v15 = vmul.f32 %v1129_v14, %v647_v21  ;;  %v1157_v34 = vpop.permute.xlu0 %1156 }
 0x362   : > { %v1165_v30 = vmul.f32 %v1157_v34, %v868_v41  ;;  %v1166_v27 = vmul.f32 %v1157_v34, %v869_v48 }
 0x364   : > { %v1173_v39 = vadd.f32 %v1165_v30, %v1137_v31  ;;  %v1174_v26 = vadd.f32 %v1166_v27, %v1138_v15 }
 0x366   : > { %1181 = vst [vmem:[%s1967_s11 + $0x30] sm:$0xff] %v1173_v39 }
 0x367   : > { %1182 = vst [vmem:[%s1967_s11 + $0x38] sm:$0xff] %v1174_v26 }
 0x368   : > { %v1152_v42 = vpop.permute.xlu1 %1151 }
 0x369   : > { %v1163_v37 = vmul.f32 %v1152_v42, %v866_v11  ;;  %v1164_v33 = vmul.f32 %v1152_v42, %v867_v20 }
 0x36b   : > { %v1171_v41 = vadd.f32 %v1163_v37, %v1135_v19  ;;  %v1172_v45 = vadd.f32 %v1164_v33, %v1136_v28 }
 0x36d   : > { %1179 = vst [vmem:[%s1967_s11 + $0x20] sm:$0xff] %v1171_v41 }
 0x36e   : > { %1180 = vst [vmem:[%s1967_s11 + $0x28] sm:$0xff] %v1172_v45 }
 0x36f PF: > { %s20_s13 = sadd.s32 1, %s1572_s13  }
 0x370   : > { %p17_p4 = scmp.ge.s32.totalorder %s20_s13, 4  }
 0x372   :  { %19 = sbr.rel (!%p17_p4) target bundleno = 1 (0x1), region = 93 }

</bundles_post_ra>
